<compile_context>
chip_gen: v5e
topology: v5e:2x2
jax: 0.10.0
libtpu: 0.0.40
codegen_flags: <defaults>
</compile_context>

<pallas_src>
import jax
import jax.numpy as jnp
import numpy as np
from jax.experimental import pallas as pl
from jax.experimental.pallas import tpu as pltpu

PREDICT_NEXT_ACTION = False
NUM_ACTIONS = 4 + (1 if PREDICT_NEXT_ACTION else 0)   # = 4
PHI_OUT_FEATURES = 32
HIDDEN = 256

# Lane-axis (batch) tile: multiple of 128.  2048 amortizes the ~0.35 us
# per-grid-step overhead on all generations while keeping the per-step VMEM
# footprint ~8.8 MiB (D=1024).  v7x users with very large batches can raise it
# to 4096 (still inside the 32 MiB default scoped VMEM), optionally with
# pipeline_mode=pl.Buffered(3) on the x BlockSpec.
MAX_BATCH_TILE = 2048
VMEM_LIMIT_BYTES = 32 * 1024 * 1024


def _predictor_kernel(xT_ref, a_ref, weffT_ref, wab_ref, outT_ref):
    # Single folded matmul on the MXU, f32 accumulation, batch on the lane axis.
    acc = jnp.dot(weffT_ref[...], xT_ref[...],
                  preferred_element_type=jnp.float32)          # (F, TB)
    # Action (+ folded bias) contribution: nested 4-way select over the tiny
    # (F, A) table.  Pure VPU compare/select work.
    a = a_ref[...]                                             # (1, TB) int32
    wab = wab_ref[...]                                         # (F, A)  f32
    sel = wab[:, NUM_ACTIONS - 1:NUM_ACTIONS]                  # default column
    for k in range(NUM_ACTIONS - 2, -1, -1):
        sel = jnp.where(a == k, wab[:, k:k + 1], sel)          # -> (F, TB)
    outT_ref[...] = acc + sel


def fold_params(params):
    """Fold phi -> fc1 -> fc2 (all affine, no activation) into one affine map,
    stored in the transposed (feature-major) layout the kernel consumes.
    Done once in f32; the large (F, D) weight is cast to bf16 for the kernel."""
    w12 = params["w1s"] @ params["w2"]                                    # (F, F)
    w_effT = (params["wphi"] @ w12).T.astype(jnp.bfloat16)                # (F, D)
    b_eff = (params["bphi"] @ w12 + params["b1"] @ params["w2"]
             + params["b2"])                                              # (1, F)
    # Each sample selects exactly one action row, so folding b_eff into every
    # row of the action table is equivalent to a separate "+ b_eff".
    wab = ((params["w1a"] @ params["w2"]) + b_eff).T.astype(jnp.float32)  # (F, A)
    return {"w_effT": w_effT, "wab": wab}


def state_feature_predictor(x_dB, a_idx, folded):
    """x_dB: (D, B) flattened phi input in batch-last (producer) layout.
    a_idx: (B,) integer action indices.  Returns (B, F) float32."""
    D, B = x_dB.shape
    F, A = folded["wab"].shape

    x = x_dB.astype(jnp.bfloat16)                 # halve the dominant HBM stream
    a2 = a_idx.astype(jnp.int32).reshape(1, B)    # batch on the lane axis

    tb = min(MAX_BATCH_TILE, B)                   # full B or a multiple of 128
    grid = (pl.cdiv(B, tb),)

    cost = pl.CostEstimate(
        flops=2 * B * D * F,
        transcendentals=0,
        bytes_accessed=2 * B * D + 4 * B + 2 * D * F + 4 * F * A + 4 * B * F,
    )

    out_fb = pl.pallas_call(
        _predictor_kernel,
        out_shape=jax.ShapeDtypeStruct((F, B), jnp.float32),
        grid=grid,
        in_specs=[
            pl.BlockSpec((D, tb), lambda i: (0, i)),   # x^T tile (pipelined over batch)
            pl.BlockSpec((1, tb), lambda i: (0, i)),   # action-index tile
            pl.BlockSpec((F, D), lambda i: (0, 0)),    # W_eff^T, VMEM-resident
            pl.BlockSpec((F, A), lambda i: (0, 0)),    # action(+bias) table
        ],
        out_specs=pl.BlockSpec((F, tb), lambda i: (0, i)),   # lane-dense output
        compiler_params=pltpu.CompilerParams(
            dimension_semantics=("parallel",),   # shard batch tiles across TCs (v7x)
            vmem_limit_bytes=VMEM_LIMIT_BYTES,
        ),
        cost_estimate=cost,
    )(x, a2, folded["w_effT"], folded["wab"])

    # Tiny (F, B) -> (B, F) layout restore to match the module's output
    # (<1% of total HBM traffic; the dominant x stream is never transposed).
    return out_fb.T


def _linear_init(key, fan_in, fan_out):
    """Deterministic nn.Linear-style init: U(-1/sqrt(fan_in), 1/sqrt(fan_in)).
    Weight stored already transposed, shape (fan_in, fan_out)."""
    kw, kb = jax.random.split(key)
    bound = 1.0 / np.sqrt(fan_in)
    w = jax.random.uniform(kw, (fan_in, fan_out), jnp.float32, -bound, bound)
    b = jax.random.uniform(kb, (1, fan_out), jnp.float32, -bound, bound)
    return w, b


if __name__ == "__main__":
    key = jax.random.PRNGKey(0)
    k_s, k_a, k_phi, k_fc1, k_fc2 = jax.random.split(key, 5)

    # Small shapes consistent with the module.
    B, H, W, C = 2, 16, 16, 4
    F = PHI_OUT_FEATURES
    D = C * W * H                      # flattened phi input dim

    # Inputs
    s_t0 = jax.random.normal(k_s, (B, H, W, C), jnp.float32)
    a_idx = jax.random.randint(k_a, (B,), 0, NUM_ACTIONS)
    a_onehot = jax.nn.one_hot(a_idx, NUM_ACTIONS, dtype=jnp.float32)

    # to_phi_input keeps dim 0 and reverses the rest: (B,H,W,C) -> (B,C,W,H);
    # phi flattens.  The kernel consumes the SAME permutation emitted batch-last
    # as (D, B) — one transpose either way, no extra pass.
    x_dB = jnp.transpose(s_t0, (3, 2, 1, 0)).reshape(D, B)

    # Parameters (deterministic, synthetic); phi frozen (no_grad only affects autograd).
    wphi, bphi = _linear_init(k_phi, D, F)                       # phi: Linear(D, F)
    w1_full, b1 = _linear_init(k_fc1, F + NUM_ACTIONS, HIDDEN)   # fc1: Linear(F+4, 256)
    w2, b2 = _linear_init(k_fc2, HIDDEN, F)                      # fc2: Linear(256, F)
    params = {
        "wphi": wphi, "bphi": bphi,
        "w1s": w1_full[:F, :], "w1a": w1_full[F:, :], "b1": b1,
        "w2": w2, "b2": b2,
    }
    folded = fold_params(params)   # one-time affine folding (not per call)

    out = state_feature_predictor(x_dB, a_idx, folded)
    out = jax.block_until_ready(out)

    # Pure-JAX f32 reference of the original (un-folded) forward semantics.
    x_flat = jnp.transpose(s_t0, (0, 3, 2, 1)).reshape(B, D)
    phi_s = x_flat @ wphi + bphi
    v = jnp.concatenate([phi_s, a_onehot], axis=1)
    ref = (v @ w1_full + b1) @ w2 + b2
    # Loosened tolerance: kernel uses bf16 x / folded bf16 weights (f32 accumulation).
    np.testing.assert_allclose(np.asarray(out), np.asarray(ref), rtol=2e-2, atol=2e-2)

    print("KERNEL_OK")
</pallas_src>

<mosaic_0001>
module attributes {stable_mosaic.version = 11 : i64} {
  func.func @_predictor_kernel(%arg0: i32, %arg1: memref<1024x2xbf16, #tpu.memory_space<vmem>>, %arg2: memref<1x2xi32, #tpu.memory_space<vmem>>, %arg3: memref<32x1024xbf16, #tpu.memory_space<vmem>>, %arg4: memref<32x4xf32, #tpu.memory_space<vmem>>, %arg5: memref<32x2xf32, #tpu.memory_space<vmem>>) attributes {dimension_semantics = [#tpu.dimension_semantics<parallel>], iteration_bounds = array<i64: 1>, scalar_prefetch = 0 : i64, scratch_operands = 0 : i64, tpu.core_type = #tpu.core_type<tc>, window_params = [{transform_indices = @transform_0, window_bounds = array<i64: 1024, 2>}, {transform_indices = @transform_1, window_bounds = array<i64: 1, 2>}, {pipeline_mode = #tpu.pipeline_mode<synchronous>, transform_indices = @transform_2, window_bounds = array<i64: 32, 1024>}, {pipeline_mode = #tpu.pipeline_mode<synchronous>, transform_indices = @transform_3, window_bounds = array<i64: 32, 4>}, {transform_indices = @transform_4, window_bounds = array<i64: 32, 2>}]} {
    %c0 = arith.constant 0 : index
    %c0_0 = arith.constant 0 : index
    %0 = vector.load %arg3[%c0, %c0_0] : memref<32x1024xbf16, #tpu.memory_space<vmem>>, vector<32x1024xbf16>
    %c0_1 = arith.constant 0 : index
    %c0_2 = arith.constant 0 : index
    %1 = vector.load %arg1[%c0_1, %c0_2] : memref<1024x2xbf16, #tpu.memory_space<vmem>>, vector<1024x2xbf16>
    %cst = arith.constant dense<0.000000e+00> : vector<32x2xf32>
    %2 = tpu.matmul %0, %1, %cst {dimension_numbers = #tpu.dot_dimension_numbers<[1], [0], [0], [1], [0, 0, 1, 1], [], []>} : vector<32x1024xbf16>, vector<1024x2xbf16>, vector<32x2xf32> -> vector<32x2xf32>
    %c0_3 = arith.constant 0 : index
    %c0_4 = arith.constant 0 : index
    %3 = vector.load %arg2[%c0_3, %c0_4] : memref<1x2xi32, #tpu.memory_space<vmem>>, vector<1x2xi32>
    %c0_5 = arith.constant 0 : index
    %c0_6 = arith.constant 0 : index
    %4 = vector.load %arg4[%c0_5, %c0_6] : memref<32x4xf32, #tpu.memory_space<vmem>>, vector<32x4xf32>
    %5 = vector.extract_strided_slice %4 {offsets = [0, 3], sizes = [32, 1], strides = [1, 1]} : vector<32x4xf32> to vector<32x1xf32>
    %c2_i32 = arith.constant 2 : i32
    %6 = vector.broadcast %c2_i32 : i32 to vector<1x2xi32>
    %7 = arith.cmpi eq, %3, %6 : vector<1x2xi32>
    %8 = vector.extract_strided_slice %4 {offsets = [0, 2], sizes = [32, 1], strides = [1, 1]} : vector<32x4xf32> to vector<32x1xf32>
    %9 = vector.shape_cast %7 : vector<1x2xi1> to vector<1x2xi1>
    %10 = vector.broadcast %9 : vector<1x2xi1> to vector<32x2xi1>
    %11 = vector.shape_cast %8 : vector<32x1xf32> to vector<32x1xf32>
    %12 = vector.broadcast %11 : vector<32x1xf32> to vector<32x2xf32>
    %13 = vector.shape_cast %5 : vector<32x1xf32> to vector<32x1xf32>
    %14 = vector.broadcast %13 : vector<32x1xf32> to vector<32x2xf32>
    %15 = arith.select %10, %12, %14 : vector<32x2xi1>, vector<32x2xf32>
    %c1_i32 = arith.constant 1 : i32
    %16 = vector.broadcast %c1_i32 : i32 to vector<1x2xi32>
    %17 = arith.cmpi eq, %3, %16 : vector<1x2xi32>
    %18 = vector.extract_strided_slice %4 {offsets = [0, 1], sizes = [32, 1], strides = [1, 1]} : vector<32x4xf32> to vector<32x1xf32>
    %19 = vector.shape_cast %17 : vector<1x2xi1> to vector<1x2xi1>
    %20 = vector.broadcast %19 : vector<1x2xi1> to vector<32x2xi1>
    %21 = vector.shape_cast %18 : vector<32x1xf32> to vector<32x1xf32>
    %22 = vector.broadcast %21 : vector<32x1xf32> to vector<32x2xf32>
    %23 = arith.select %20, %22, %15 : vector<32x2xi1>, vector<32x2xf32>
    %c0_i32 = arith.constant 0 : i32
    %24 = vector.broadcast %c0_i32 : i32 to vector<1x2xi32>
    %25 = arith.cmpi eq, %3, %24 : vector<1x2xi32>
    %26 = vector.extract_strided_slice %4 {offsets = [0, 0], sizes = [32, 1], strides = [1, 1]} : vector<32x4xf32> to vector<32x1xf32>
    %27 = vector.shape_cast %25 : vector<1x2xi1> to vector<1x2xi1>
    %28 = vector.broadcast %27 : vector<1x2xi1> to vector<32x2xi1>
    %29 = vector.shape_cast %26 : vector<32x1xf32> to vector<32x1xf32>
    %30 = vector.broadcast %29 : vector<32x1xf32> to vector<32x2xf32>
    %31 = arith.select %28, %30, %23 : vector<32x2xi1>, vector<32x2xf32>
    %32 = arith.addf %2, %31 : vector<32x2xf32>
    %c0_7 = arith.constant 0 : index
    %c0_8 = arith.constant 0 : index
    %33 = vector.load %arg5[%c0_7, %c0_8] : memref<32x2xf32, #tpu.memory_space<vmem>>, vector<32x2xf32>
    tpu.vector_store %arg5[%c0_7, %c0_8], %32 {strides = array<i32>} : memref<32x2xf32, #tpu.memory_space<vmem>>, vector<32x2xf32>,
    return
  }
  func.func @transform_0(%arg0: i32) -> (i32, i32) {
    %c0_i32 = arith.constant 0 : i32
    %c0_i32_0 = arith.constant 0 : i32
    return %c0_i32, %arg0 : i32, i32
  }
  func.func @transform_1(%arg0: i32) -> (i32, i32) {
    %c0_i32 = arith.constant 0 : i32
    %c0_i32_0 = arith.constant 0 : i32
    return %c0_i32, %arg0 : i32, i32
  }
  func.func @transform_2(%arg0: i32) -> (i32, i32) {
    %c0_i32 = arith.constant 0 : i32
    %c0_i32_0 = arith.constant 0 : i32
    %c0_i32_1 = arith.constant 0 : i32
    return %c0_i32, %c0_i32_0 : i32, i32
  }
  func.func @transform_3(%arg0: i32) -> (i32, i32) {
    %c0_i32 = arith.constant 0 : i32
    %c0_i32_0 = arith.constant 0 : i32
    %c0_i32_1 = arith.constant 0 : i32
    return %c0_i32, %c0_i32_0 : i32, i32
  }
  func.func @transform_4(%arg0: i32) -> (i32, i32) {
    %c0_i32 = arith.constant 0 : i32
    %c0_i32_0 = arith.constant 0 : i32
    return %c0_i32, %arg0 : i32, i32
  }
}

</mosaic_0001>

<bundles_post_ra>
// kernel: tpu_custom_call.1
= control target key start
LH: loop header
LB: loop body
LE: loop exit
PB: predicated region body
PF: predicated region fallthrough
CT: control target
= control target key end

     0   :  { %v1298_v3 = vmov 2   ;;  %v1299_v5 = vmov 3   ;;  %v1300_v40 = vmov 1   ;;  %vm874_vm6 = vcmask 15360   ;;  %s1721_s0 = inlined_call_operand.vmem [shape: bf16[1024,2], index: 0, kind: input, shape index: {}]   ;;  %s1722_s3 = inlined_call_operand.vmem [shape: f32[32,4], index: 3, kind: input, shape index: {}]   ;;  %s1723_s2 = inlined_call_operand.vmem [shape: bf16[32,1024], index: 2, kind: input, shape index: {}]   ;;  %s1724_s1 = inlined_call_operand.vmem [shape: s32[1,2], index: 1, kind: input, shape index: {}]   ;;  %s1725_s4 = inlined_call_operand.vmem [shape: f32[32,2], index: 4, kind: output, shape index: {}]  }
   0x1   :  { %v1226_v0 = vld [vmem:[%s1721_s0 + $0x38] sm:$0xff]  ;;  %1288 = vset.pattern.permute.xlu1 %v1298_v3  ;;  %1287 = vset.pattern.permute.xlu0 %v1298_v3  ;;  %v1225_v6 = vld [vmem:[%s1721_s0 + $0x30] sm:$0xff]  ;;  %v1224_v11 = vld [vmem:[%s1721_s0 + $0x28] sm:$0xff] }
   0x2   :  { %v1234_v1 = vld [vmem:[%s1721_s0 + $0x78] sm:$0xff]  ;;  %1289 = vset.pattern.permute.xlu2 %v1299_v5  ;;  %722 = vmatpush.bf16.msra.mxu0 %v1226_v0  ;;  %v1233_v7 = vld [vmem:[%s1721_s0 + $0x70] sm:$0xff]  ;;  %v1232_v12 = vld [vmem:[%s1721_s0 + $0x68] sm:$0xff] }
   0x3   :  { %v1242_v2 = vld [vmem:[%s1721_s0 + $0xb8] sm:$0xff]  ;;  %741 = vmatpush.bf16.msra.mxu1 %v1234_v1  ;;  %v1349_v8 = vld [vmem:[%s1722_s3 + $0x10] sm:$0xff]  ;;  %v1240_v13 = vld [vmem:[%s1721_s0 + $0xa8] sm:$0xff] }
   0x4   :  { %v1250_v4 = vld [vmem:[%s1721_s0 + $0xf8] sm:$0xff]  ;;  %760 = vmatpush.bf16.msra.mxu2 %v1242_v2  ;;  %v1241_v9 = vld [vmem:[%s1721_s0 + $0xb0] sm:$0xff]  ;;  %182 = vperm.xlu1 %1288, %v1349_v8   ;;  %v1248_v14 = vld [vmem:[%s1721_s0 + $0xe8] sm:$0xff] }
   0x5   :  { %779 = vmatpush.bf16.msra.mxu3 %v1250_v4  ;;  %v1249_v10 = vld [vmem:[%s1721_s0 + $0xf0] sm:$0xff]  ;;  %v1373_v15 = vld [vmem:[%s1722_s3] sm:$0xff]  ;;  %v1378_v16 = vld [vmem:[%s1722_s3 + $0x18] sm:$0xff] }
   0x6   :  { %723 = vmatpush.bf16.msra.mxu0 %v1225_v6  ;;  %172 = vperm.xlu0 %1287, %v1373_v15   ;;  %v1223_v17 = vld [vmem:[%s1721_s0 + $0x20] sm:$0xff]  ;;  %v1222_v21 = vld [vmem:[%s1721_s0 + $0x18] sm:$0xff]  ;;  %v1404_v23 = vld [vmem:[%s1722_s3 + $0x8] sm:$0xff] }
   0x7   :  { %742 = vmatpush.bf16.msra.mxu1 %v1233_v7  ;;  %191 = vperm.xlu2 %1289, %v1373_v15   ;;  %v1231_v18 = vld [vmem:[%s1721_s0 + $0x60] sm:$0xff]  ;;  %v1230_v22 = vld [vmem:[%s1721_s0 + $0x58] sm:$0xff]  ;;  %v1221_v26 = vld [vmem:[%s1721_s0 + $0x10] sm:$0xff] }
   0x8   :  { %761 = vmatpush.bf16.msra.mxu2 %v1241_v9  ;;  %v1239_v19 = vld [vmem:[%s1721_s0 + $0xa0] sm:$0xff]  ;;  %v1238_v24 = vld [vmem:[%s1721_s0 + $0x98] sm:$0xff]  ;;  %v1229_v27 = vld [vmem:[%s1721_s0 + $0x50] sm:$0xff] }
   0x9   :  { %780 = vmatpush.bf16.msra.mxu3 %v1249_v10  ;;  %v1247_v20 = vld [vmem:[%s1721_s0 + $0xe0] sm:$0xff]  ;;  %v1246_v25 = vld [vmem:[%s1721_s0 + $0xd8] sm:$0xff]  ;;  %v1237_v28 = vld [vmem:[%s1721_s0 + $0x90] sm:$0xff] }
   0xa   :  { %724 = vmatpush.bf16.msra.mxu0 %v1224_v11  ;;  %v1245_v29 = vld [vmem:[%s1721_s0 + $0xd0] sm:$0xff]  ;;  %v1220_v30 = vld [vmem:[%s1721_s0 + $0x8] sm:$0xff]  ;;  %v1219_v34 = vld [vmem:[%s1721_s0] sm:$0xff] }
   0xb   :  { %743 = vmatpush.bf16.msra.mxu1 %v1232_v12  ;;  %v1228_v31 = vld [vmem:[%s1721_s0 + $0x48] sm:$0xff]  ;;  %v1227_v35 = vld [vmem:[%s1721_s0 + $0x40] sm:$0xff]  ;;  %v1274_v47 = vld [vmem:[%s1721_s0 + $0x1b8] sm:$0xff]  ;;  %v1301_v12 = vmov 0  }
   0xc   :  { %762 = vmatpush.bf16.msra.mxu2 %v1240_v13  ;;  %187 = vperm.xlu1 %1288, %v1378_v16   ;;  %v1236_v32 = vld [vmem:[%s1721_s0 + $0x88] sm:$0xff]  ;;  %v1235_v36 = vld [vmem:[%s1721_s0 + $0x80] sm:$0xff]  ;;  %v1258_v48 = vld [vmem:[%s1721_s0 + $0x138] sm:$0xff] }
   0xd   :  { %781 = vmatpush.bf16.msra.mxu3 %v1248_v14  ;;  %v1244_v33 = vld [vmem:[%s1721_s0 + $0xc8] sm:$0xff]  ;;  %v1243_v37 = vld [vmem:[%s1721_s0 + $0xc0] sm:$0xff]  ;;  %v1266_v53 = vld [vmem:[%s1721_s0 + $0x178] sm:$0xff] }
   0xe   :  { %725 = vmatpush.bf16.msra.mxu0 %v1223_v17  ;;  %177 = vperm.xlu0 %1287, %v1404_v23   ;;  %v885_v38 = vld [vmem:[%s1723_s2] sm:$0xf]  ;;  %v1203_v41 = vld [vmem:[%s1723_s2 + $0x4] sm:$0xf]  ;;  %v893_v43 = vld [vmem:[%s1723_s2 + $0x8] sm:$0xf] }
   0xf   :  { %744 = vmatpush.bf16.msra.mxu1 %v1231_v18  ;;  %195 = vperm.xlu2 %1289, %v1404_v23   ;;  %v1207_v39 = vld [vmem:[%s1723_s2 + $0x1c] sm:$0xf0]  ;;  %v887_v42 = vld [vmem:[%s1723_s2 + $0x20] sm:$0xf0]  ;;  %v1208_v44 = vld [vmem:[%s1723_s2 + $0x24] sm:$0xf0] }
  0x10   :  { %763 = vmatpush.bf16.msra.mxu2 %v1239_v19  ;;  %v1204_v45 = vld [vmem:[%s1723_s2 + $0xc] sm:$0xf]  ;;  %v886_v49 = vor.u32 %v1207_v39, %v885_v38  ;;  %v890_v50 = vor.u32 %v1203_v41, %v887_v42  ;;  %v894_v51 = vor.u32 %v1208_v44, %v893_v43  ;;  %v1282_v54 = vld [vmem:[%s1721_s0 + $0x1f8] sm:$0xff]  ;;  %v1273_v55 = vld [vmem:[%s1721_s0 + $0x1b0] sm:$0xff] }
  0x11   :  { %782 = vmatpush.bf16.msra.mxu3 %v1247_v20  ;;  %v895_v46 = vld [vmem:[%s1723_s2 + $0x28] sm:$0xf0]  ;;  %v1257_v56 = vld [vmem:[%s1721_s0 + $0x130] sm:$0xff]  ;;  %v1271_v63 = vld [vmem:[%s1721_s0 + $0x1a0] sm:$0xff] }
  0x12   :  { %726 = vmatpush.bf16.msra.mxu0 %v1222_v21  ;;  %v898_v52 = vor.u32 %v1204_v45, %v895_v46  ;;  %v1265_v57 = vld [vmem:[%s1721_s0 + $0x170] sm:$0xff]  ;;  %v1272_v59 = vld [vmem:[%s1721_s0 + $0x1a8] sm:$0xff]  ;;  %v1255_v0 = vld [vmem:[%s1721_s0 + $0x120] sm:$0xff] }
  0x13   :  { %745 = vmatpush.bf16.msra.mxu1 %v1230_v22  ;;  %v1281_v58 = vld [vmem:[%s1721_s0 + $0x1f0] sm:$0xff]  ;;  %v1256_v60 = vld [vmem:[%s1721_s0 + $0x128] sm:$0xff]  ;;  %v1263_v1 = vld [vmem:[%s1721_s0 + $0x160] sm:$0xff] }
  0x14   :  { %764 = vmatpush.bf16.msra.mxu2 %v1238_v24  ;;  %1291 = vset.pattern.permute.xlu1 %v1299_v5  ;;  %v1264_v61 = vld [vmem:[%s1721_s0 + $0x168] sm:$0xff]  ;;  %v1279_v2 = vld [vmem:[%s1721_s0 + $0x1e0] sm:$0xff]  ;;  %v1270_v13 = vld [vmem:[%s1721_s0 + $0x198] sm:$0xff] }
  0x15   :  { %783 = vmatpush.bf16.msra.mxu3 %v1246_v25  ;;  %203 = vperm.xlu1 %1291, %v1378_v16   ;;  %v1280_v62 = vld [vmem:[%s1721_s0 + $0x1e8] sm:$0xff]  ;;  %v917_v3 = vld [vmem:[%s1723_s2 + $0x40] sm:$0xf]  ;;  %v919_v6 = vld [vmem:[%s1723_s2 + $0x60] sm:$0xf0] }
  0x16   :  { %727 = vmatpush.bf16.msra.mxu0 %v1221_v26  ;;  %1290 = vset.pattern.permute.xlu0 %v1299_v5  ;;  %v1215_v4 = vld [vmem:[%s1723_s2 + $0x5c] sm:$0xf0]  ;;  %v1211_v5 = vld [vmem:[%s1723_s2 + $0x44] sm:$0xf]  ;;  %v925_v7 = vld [vmem:[%s1723_s2 + $0x48] sm:$0xf] }
  0x17   :  { %746 = vmatpush.bf16.msra.mxu1 %v1229_v27  ;;  %1292 = vset.pattern.permute.xlu2 %v1300_v40  ;;  %v1216_v9 = vld [vmem:[%s1723_s2 + $0x64] sm:$0xf0]  ;;  %v1212_v10 = vld [vmem:[%s1723_s2 + $0x4c] sm:$0xf]  ;;  %v918_v14 = vor.u32 %v1215_v4, %v917_v3  ;;  %v922_v17 = vor.u32 %v1211_v5, %v919_v6  ;;  %v1254_v20 = vld [vmem:[%s1721_s0 + $0x118] sm:$0xff] }
  0x18   :  { %765 = vmatpush.bf16.msra.mxu2 %v1237_v28  ;;  %199 = vperm.xlu0 %1290, %v1349_v8   ;;  %v927_v11 = vld [vmem:[%s1723_s2 + $0x68] sm:$0xf0]  ;;  %v926_v18 = vor.u32 %v1216_v9, %v925_v7  ;;  %v1262_v21 = vld [vmem:[%s1721_s0 + $0x158] sm:$0xff]  ;;  %v1269_v22 = vld [vmem:[%s1721_s0 + $0x190] sm:$0xff] }
  0x19   :  { %784 = vmatpush.bf16.msra.mxu3 %v1245_v29  ;;  %215 = vperm.xlu2 %1292, %v1373_v15   ;;  %v930_v19 = vor.u32 %v1212_v10, %v927_v11  ;;  %v1253_v24 = vld [vmem:[%s1721_s0 + $0x110] sm:$0xff]  ;;  %v1268_v26 = vld [vmem:[%s1721_s0 + $0x188] sm:$0xff]  ;;  %v1206_v38 = vld [vmem:[%s1723_s2 + $0x1c] sm:$0xf] }
  0x1a   :  { %728 = vmatpush.bf16.msra.mxu0 %v1220_v30  ;;  %v1261_v25 = vld [vmem:[%s1721_s0 + $0x150] sm:$0xff]  ;;  %v1252_v27 = vld [vmem:[%s1721_s0 + $0x108] sm:$0xff]  ;;  %v1251_v30 = vld [vmem:[%s1721_s0 + $0x100] sm:$0xff] }
  0x1b   :  { %747 = vmatpush.bf16.msra.mxu1 %v1228_v31  ;;  %v1260_v28 = vld [vmem:[%s1721_s0 + $0x148] sm:$0xff]  ;;  %v1259_v31 = vld [vmem:[%s1721_s0 + $0x140] sm:$0xff]  ;;  %v911_v39 = vld [vmem:[%s1723_s2 + $0x38] sm:$0xf0] }
  0x1c   :  { %766 = vmatpush.bf16.msra.mxu2 %v1236_v32  ;;  %v1276_v29 = vld [vmem:[%s1721_s0 + $0x1c8] sm:$0xff]  ;;  %v1275_v32 = vld [vmem:[%s1721_s0 + $0x1c0] sm:$0xff]  ;;  %v914_v43 = vor.u32 %v1206_v38, %v911_v39  ;;  %v933_v44 = vld [vmem:[%s1723_s2 + $0x50] sm:$0xf] }
  0x1d   :  { %785 = vmatpush.bf16.msra.mxu3 %v1244_v33  ;;  %1293 = vset.pattern.permute.xlu1 %v1300_v40  ;;  %v901_v33 = vld [vmem:[%s1723_s2 + $0x10] sm:$0xf]  ;;  %v1213_v46 = vld [vmem:[%s1723_s2 + $0x54] sm:$0xf] }
  0x1e   :  { %729 = vmatpush.bf16.msra.mxu0 %v1219_v34  ;;  %219 = vperm.xlu1 %1293, %v1404_v23   ;;  %v1209_v34 = vld [vmem:[%s1723_s2 + $0x2c] sm:$0xf0] }
  0x1f   :  { %748 = vmatpush.bf16.msra.mxu1 %v1227_v35  ;;  %v1205_v35 = vld [vmem:[%s1723_s2 + $0x14] sm:$0xf]  ;;  %v1217_v45 = vld [vmem:[%s1723_s2 + $0x6c] sm:$0xf0] }
  0x20   :  { %767 = vmatpush.bf16.msra.mxu2 %v1235_v36  ;;  %1294 = vset.pattern.permute.xlu0 %v1300_v40  ;;  %v909_v36 = vld [vmem:[%s1723_s2 + $0x18] sm:$0xf]  ;;  %v902_v40 = vor.u32 %v1209_v34, %v901_v33 }
  0x21   :  { %786 = vmatpush.bf16.msra.mxu3 %v1243_v37  ;;  %730 = vmatmul.bf16.vlgmr.msra.gmra.mxu0 %v886_v49  ;;  %v1210_v37 = vld [vmem:[%s1723_s2 + $0x34] sm:$0xf0] }
  0x22   :  { %798 = vmatpush.bf16.msrb.mxu0 %v1258_v48  ;;  %749 = vmatmul.bf16.vlgmr.msra.gmra.mxu1 %v890_v50  ;;  %v910_v42 = vor.u32 %v1210_v37, %v909_v36  ;;  %v941_v48 = vld [vmem:[%s1723_s2 + $0x58] sm:$0xf]  ;;  %v1214_v50 = vld [vmem:[%s1723_s2 + $0x5c] sm:$0xf] }
  0x23   :  { %768 = vmatmul.bf16.vlgmr.msra.gmra.mxu2 %v894_v51  ;;  %817 = vmatpush.bf16.msrb.mxu1 %v1266_v53  ;;  %v1218_v49 = vld [vmem:[%s1723_s2 + $0x74] sm:$0xf0]  ;;  %v943_v51 = vld [vmem:[%s1723_s2 + $0x78] sm:$0xf0] }
  0x24   :  { %836 = vmatpush.bf16.msrb.mxu2 %v1274_v47  ;;  %787 = vmatmul.bf16.vlgmr.msra.gmra.mxu3 %v898_v52  ;;  %v935_v47 = vld [vmem:[%s1723_s2 + $0x70] sm:$0xf0]  ;;  %v934_v52 = vor.u32 %v1217_v45, %v933_v44 }
  0x25   :  { %855 = vmatpush.bf16.msrb.mxu3 %v1282_v54  ;;  %227 = vperm.xlu0 %1294, %v1378_v16   ;;  %v938_v53 = vor.u32 %v1213_v46, %v935_v47  ;;  %v942_v54 = vor.u32 %v1218_v49, %v941_v48 }
  0x26   :  { %799 = vmatpush.bf16.msrb.mxu0 %v1257_v56  ;;  %223 = vperm.xlu2 %1292, %v1349_v8  }
  0x27   :  { %818 = vmatpush.bf16.msrb.mxu1 %v1265_v57  ;;  %1295 = vset.pattern.permute.xlu1 %v1301_v12 }
  0x28   :  { %837 = vmatpush.bf16.msrb.mxu2 %v1273_v55  ;;  %239 = vperm.xlu1 %1295, %v1373_v15   ;;  %v1278_v15 = vld [vmem:[%s1721_s0 + $0x1d8] sm:$0xff]  ;;  %v946_v55 = vor.u32 %v1214_v50, %v943_v51 }
  0x29   :  { %856 = vmatpush.bf16.msrb.mxu3 %v1281_v58 }
  0x2a   :  { %800 = vmatpush.bf16.msrb.mxu0 %v1256_v60 }
  0x2b   :  { %819 = vmatpush.bf16.msrb.mxu1 %v1264_v61  ;;  %v161_v61 = vld [vmem:[%s1724_s1] sm:$0x1] }
  0x2c   :  { %838 = vmatpush.bf16.msrb.mxu2 %v1272_v59  ;;  %vm166_vm0 = vcmp.eq.s32.totalorder %v161_v61, 2  ;;  %vm210_vm1 = vcmp.eq.s32.totalorder %v161_v61, 1  ;;  %vm234_vm2 = vcmp.eq.s32.totalorder %v161_v61, 0 }
  0x2d   :  { %857 = vmatpush.bf16.msrb.mxu3 %v1280_v62  ;;  %1297 = vset.pattern.permute.xlu0 %v1301_v12  ;;  %v211_v3 = vsel %vm210_vm1, 1, %v1301_v12  ;;  %v235_v9 = vsel %vm234_vm2, 1, %v1301_v12 }
  0x2e   :  { %801 = vmatpush.bf16.msrb.mxu0 %v1255_v0  ;;  %1296 = vset.pattern.permute.xlu2 %v1301_v12  ;;  %v167_v0 = vsel %vm166_vm0, 1, %v1301_v12  ;;  %v212_v7 = vperm.slane %v211_v3, 0 }
  0x2f   :  { %820 = vmatpush.bf16.msrb.mxu1 %v1263_v1  ;;  %243 = vperm.xlu2 %1296, %v1404_v23   ;;  %v1277_v23 = vld [vmem:[%s1721_s0 + $0x1d0] sm:$0xff] }
  0x30   :  { %839 = vmatpush.bf16.msrb.mxu2 %v1271_v63  ;;  %247 = vperm.xlu1 %1295, %v1349_v8   ;;  %v1267_v8 = vld [vmem:[%s1721_s0 + $0x180] sm:$0xff]  ;;  %vm1673_vm4 = vcmp.eq.s32.totalorder %v212_v7, 1 }
  0x31   :  { %858 = vmatpush.bf16.msrb.mxu3 %v1279_v2  ;;  %735 = vmatmul.bf16.gmra.mxu0 %v918_v14  ;;  %v168_v2 = vperm.slane %v167_v0, 0 }
  0x32   :  { %754 = vmatmul.bf16.gmra.mxu1 %v922_v17  ;;  %802 = vmatpush.bf16.msrb.mxu0 %v1254_v20  ;;  %v236_v17 = vperm.slane %v235_v9, 0 }
  0x33   :  { %773 = vmatmul.bf16.gmra.mxu2 %v926_v18  ;;  %821 = vmatpush.bf16.msrb.mxu1 %v1262_v21  ;;  %vm1667_vm3 = vcmp.eq.s32.totalorder %v168_v2, 1 }
  0x34   :  { %840 = vmatpush.bf16.msrb.mxu2 %v1270_v13  ;;  %792 = vmatmul.bf16.gmra.mxu3 %v930_v19  ;;  %vm1679_vm5 = vcmp.eq.s32.totalorder %v236_v17, 1 }
  0x35   :  { %859 = vmatpush.bf16.msrb.mxu3 %v1278_v15 }
  0x36   :  { %803 = vmatpush.bf16.msrb.mxu0 %v1253_v24 }
  0x37   :  { %822 = vmatpush.bf16.msrb.mxu1 %v1261_v25  ;;  %251 = vperm.xlu2 %1296, %v1378_v16   ;;  %v903_v16 = vld [vmem:[%s1723_s2 + $0x30] sm:$0xf0] }
  0x38   :  { %841 = vmatpush.bf16.msrb.mxu2 %v1269_v22  ;;  %v906_v41 = vor.u32 %v1205_v35, %v903_v16 }
  0x39   :  { %860 = vmatpush.bf16.msrb.mxu3 %v1277_v23 }
  0x3a   :  { %804 = vmatpush.bf16.msrb.mxu0 %v1252_v27 }
  0x3b   :  { %823 = vmatpush.bf16.msrb.mxu1 %v1260_v28 }
  0x3c   :  { %842 = vmatpush.bf16.msrb.mxu2 %v1268_v26 }
  0x3d   :  { %861 = vmatpush.bf16.msrb.mxu3 %v1276_v29 }
  0x3e   :  { %805 = vmatpush.bf16.msrb.mxu0 %v1251_v30 }
  0x3f   :  { %824 = vmatpush.bf16.msrb.mxu1 %v1259_v31 }
  0x40   :  { %843 = vmatpush.bf16.msrb.mxu2 %v1267_v8 }
  0x41   :  { %862 = vmatpush.bf16.msrb.mxu3 %v1275_v32  ;;  %806 = vmatmul.bf16.vlgmr.msrb.gmra.mxu0 %v902_v40 }
  0x42   :  { %825 = vmatmul.bf16.vlgmr.msrb.gmra.mxu1 %v906_v41 }
  0x43   :  { %844 = vmatmul.bf16.vlgmr.msrb.gmra.mxu2 %v910_v42 }
  0x44   :  { %863 = vmatmul.bf16.vlgmr.msrb.gmra.mxu3 %v914_v43 }
  0x51   :  { %811 = vmatmul.bf16.gmra.mxu0 %v934_v52 }
  0x52   :  { %830 = vmatmul.bf16.gmra.mxu1 %v938_v53 }
  0x53   :  { %849 = vmatmul.bf16.gmra.mxu2 %v942_v54 }
  0x54   :  { %868 = vmatmul.bf16.gmra.mxu3 %v946_v55 }
  0x61   :  { %v192_v58 = vpop.permute.xlu2 %191 }
  0x69   :  { %v196_v60 = vpop.permute.xlu2 %195 }
  0x73   :  { %v216_v4 = vpop.permute.xlu2 %215 }
  0x76   :  { %v183_v56 = vpop.permute.xlu1 %182 }
  0x78   :  { %v173_v13 = vpop.permute.xlu0 %172 }
  0x79   :  { %v206_v18 = vsel %vm1667_vm3, %v173_v13, %v192_v58 }
  0x7a   :  { %v230_v21 = vsel %vm1673_vm4, %v216_v4, %v206_v18 }
  0x7e   :  { %v1657_v57 = vpop.permute.xlu1 %187 }
  0x80   :  { %v224_v23 = vpop.permute.xlu2 %223  ;;  %v178_v27 = vpop.permute.xlu0 %177 }
  0x81   :  { %v207_v29 = vsel %vm1667_vm3, %v178_v27, %v196_v60 }
  0x87   :  { %v1659_v59 = vpop.permute.xlu1 %203 }
  0x88   :  { %v209_v54 = vsel %vm1667_vm3, %v1657_v57, %v1659_v59 }
  0x89   :  { %v244_v35 = vpop.permute.xlu2 %243 }
  0x8a   :  { %v200_v36 = vpop.permute.xlu0 %199 }
  0x8b   :  { %v208_v41 = vsel %vm1667_vm3, %v183_v56, %v200_v36 }
  0x8c   :  { %v232_v47 = vsel %vm1673_vm4, %v224_v23, %v208_v41 }
  0x90   :  { %v220_v1 = vpop.permute.xlu1 %219 }
  0x91   :  { %v231_v33 = vsel %vm1673_vm4, %v220_v1, %v207_v29  ;;  %v252_v0 = vpop.permute.xlu2 %251 }
  0x92   :  { %v255_v16 = vsel %vm1679_vm5, %v244_v35, %v231_v33 }
  0x97   :  { %v228_v51 = vpop.permute.xlu0 %227 }
  0x9a   :  { %v240_v20 = vpop.permute.xlu1 %239 }
  0x9b   :  { %v254_v26 = vsel %vm1679_vm5, %v240_v20, %v230_v21 }
  0x9e   :  { %v731_v62 = vpop.f32.mrf.mxu0 }
  0x9f   :  { %v750_v63 = vpop.f32.mrf.mxu1  ;;  %v732_v28 = vadd.f32 %v731_v62, %v254_v26 }
  0xa1   :  { %v751_v34 = vadd.f32 %v750_v63, %v732_v28  ;;  %v233_v63 = vsel %vm1673_vm4, %v228_v51, %v209_v54 }
  0xa2   :  { %v248_v45 = vpop.permute.xlu1 %247  ;;  %v257_v57 = vsel %vm1679_vm5, %v252_v0, %v233_v63 }
  0xa3   :  { %v256_v50 = vsel %vm1679_vm5, %v248_v45, %v232_v47 }
  0xa6   :  { %v769_v5 = vpop.f32.mrf.mxu2  ;;  %v733_v10 = vpop.f32.mrf.mxu0 }
  0xa7   :  { %v788_v6 = vpop.f32.mrf.mxu3  ;;  %v752_v11 = vpop.f32.mrf.mxu1  ;;  %v770_v37 = vadd.f32 %v769_v5, %v751_v34  ;;  %v734_v38 = vadd.f32 %v733_v10, %v255_v16 }
  0xa9   :  { %v789_v42 = vadd.f32 %v788_v6, %v770_v37  ;;  %v753_v46 = vadd.f32 %v752_v11, %v734_v38 }
  0xae   :  { %v771_v15 = vpop.f32.mrf.mxu2  ;;  %v736_v24 = vpop.f32.mrf.mxu0 }
  0xaf   :  { %v790_v22 = vpop.f32.mrf.mxu3  ;;  %v755_v25 = vpop.f32.mrf.mxu1  ;;  %v772_v49 = vadd.f32 %v771_v15, %v753_v46  ;;  %v737_v52 = vadd.f32 %v736_v24, %v256_v50 }
  0xb1   :  { %v791_v58 = vadd.f32 %v790_v22, %v772_v49  ;;  %v756_v1 = vadd.f32 %v755_v25, %v737_v52 }
  0xb6   :  { %v774_v8 = vpop.f32.mrf.mxu2  ;;  %v738_v31 = vpop.f32.mrf.mxu0 }
  0xb7   :  { %v793_v30 = vpop.f32.mrf.mxu3  ;;  %v757_v32 = vpop.f32.mrf.mxu1  ;;  %v775_v4 = vadd.f32 %v774_v8, %v756_v1  ;;  %v739_v59 = vadd.f32 %v738_v31, %v257_v57 }
  0xb9   :  { %v794_v9 = vadd.f32 %v793_v30, %v775_v4  ;;  %v758_v13 = vadd.f32 %v757_v32, %v739_v59 }
  0xbe   :  { %v776_v39 = vpop.f32.mrf.mxu2  ;;  %v807_v43 = vpop.f32.mrf.mxu0 }
  0xbf   :  { %v795_v40 = vpop.f32.mrf.mxu3  ;;  %v826_v44 = vpop.f32.mrf.mxu1  ;;  %v808_v48 = vadd.f32 %v807_v43, %v789_v42  ;;  %v777_v19 = vadd.f32 %v776_v39, %v758_v13 }
  0xc1   :  { %v827_v53 = vadd.f32 %v826_v44, %v808_v48  ;;  %v796_v15 = vadd.f32 %v795_v40, %v777_v19 }
  0xc6   :  { %v845_v55 = vpop.f32.mrf.mxu2  ;;  %v809_v61 = vpop.f32.mrf.mxu0 }
  0xc7   :  { %v864_v56 = vpop.f32.mrf.mxu3  ;;  %v846_v60 = vadd.f32 %v845_v55, %v827_v53  ;;  %v828_v62 = vpop.f32.mrf.mxu1  ;;  %v810_v3 = vadd.f32 %v809_v61, %v791_v58 }
  0xc9   :  { %v865_v2 = vadd.f32 %v864_v56, %v846_v60  ;;  %v829_v5 = vadd.f32 %v828_v62, %v810_v3 }
  0xcb   :  { %875 = vst.msk [vmem:[%s1725_s4] sm:$0xff] %vm874_vm6, %v865_v2 }
  0xce   :  { %v847_v6 = vpop.f32.mrf.mxu2  ;;  %v812_v11 = vpop.f32.mrf.mxu0 }
  0xcf   :  { %v866_v7 = vpop.f32.mrf.mxu3  ;;  %v848_v10 = vadd.f32 %v847_v6, %v829_v5  ;;  %v813_v17 = vadd.f32 %v812_v11, %v794_v9  ;;  %v831_v18 = vpop.f32.mrf.mxu1 }
  0xd1   :  { %v867_v14 = vadd.f32 %v866_v7, %v848_v10  ;;  %v832_v20 = vadd.f32 %v831_v18, %v813_v17 }
  0xd3   :  { %876 = vst.msk [vmem:[%s1725_s4 + $0x8] sm:$0xff] %vm874_vm6, %v867_v14 }
  0xd6   :  { %v850_v21 = vpop.f32.mrf.mxu2  ;;  %v814_v24 = vpop.f32.mrf.mxu0 }
  0xd7   :  { %v869_v12 = vpop.f32.mrf.mxu3  ;;  %v851_v22 = vadd.f32 %v850_v21, %v832_v20  ;;  %v815_v23 = vadd.f32 %v814_v24, %v796_v15  ;;  %v833_v26 = vpop.f32.mrf.mxu1 }
  0xd9   :  { %v870_v25 = vadd.f32 %v869_v12, %v851_v22  ;;  %v834_v27 = vadd.f32 %v833_v26, %v815_v23 }
  0xdb   :  { %877 = vst.msk [vmem:[%s1725_s4 + $0x10] sm:$0xff] %vm874_vm6, %v870_v25 }
  0xde   :  { %v852_v28 = vpop.f32.mrf.mxu2 }
  0xdf   :  { %v853_v29 = vadd.f32 %v852_v28, %v834_v27  ;;  %v871_v8 = vpop.f32.mrf.mxu3 }
  0xe1   :  { %v872_v30 = vadd.f32 %v871_v8, %v853_v29 }
  0xe3   :  { %878 = vst.msk [vmem:[%s1725_s4 + $0x18] sm:$0xff] %vm874_vm6, %v872_v30 }

</bundles_post_ra>
